<compile_context>
chip_gen: v6e
topology: v6e:2x2x1
jax: 0.10.0
libtpu: 0.0.40
codegen_flags: <defaults>
</compile_context>

<pallas_src>
import functools
import math

import jax
import jax.numpy as jnp
from jax import lax
from jax.experimental import pallas as pl
from jax.experimental.pallas import tpu as pltpu


# ----------------------------- small synthetic config -----------------------------
class Cfg:
    vocab_size = 128
    hidden_size = 64
    intermediate_size = 128
    num_attention_heads = 4
    num_key_value_heads = 4
    num_hidden_layers = 8
    mb_per_layer = 2
    layer_norm_eps = 1e-5
    sliding_window = 8          # first-half attention layers
    # mamba
    d_state = 16
    d_conv = 4
    expand = 2


HEAD_DIM = Cfg.hidden_size // Cfg.num_attention_heads
D_INNER = Cfg.expand * Cfg.hidden_size
DT_RANK = math.ceil(Cfg.hidden_size / 16)
NEG_INF = -1e9


def _m_tiling(M):
    tm = M if M <= 512 else 512
    return tm, pl.cdiv(M, tm)


# =============================== fused projection kernels ==========================
def _ln_linear_kernel(x_ref, lnw_ref, lnb_ref, w_ref, b_ref, o_ref, *, eps):
    x = x_ref[...].astype(jnp.float32)
    mu = jnp.mean(x, axis=-1, keepdims=True)
    xc = x - mu
    var = jnp.mean(xc * xc, axis=-1, keepdims=True)
    hn = (xc * lax.rsqrt(var + eps) * lnw_ref[...] + lnb_ref[...]).astype(jnp.bfloat16)
    y = jnp.dot(hn, w_ref[...], preferred_element_type=jnp.float32) + b_ref[...]
    o_ref[...] = y.astype(o_ref.dtype)


def ln_linear(x, lnw, lnb, w, b):
    # out = LayerNorm(x) @ w + b     (bf16 weights & output, f32 accumulation)
    M, H = x.shape
    N = w.shape[1]
    TM, nm = _m_tiling(M)
    return pl.pallas_call(
        functools.partial(_ln_linear_kernel, eps=Cfg.layer_norm_eps),
        out_shape=jax.ShapeDtypeStruct((M, N), jnp.bfloat16),
        grid=(nm,),
        in_specs=[
            pl.BlockSpec((TM, H), lambda i: (i, 0)),
            pl.BlockSpec((1, H), lambda i: (0, 0)),
            pl.BlockSpec((1, H), lambda i: (0, 0)),
            pl.BlockSpec((H, N), lambda i: (0, 0)),
            pl.BlockSpec((1, N), lambda i: (0, 0)),
        ],
        out_specs=pl.BlockSpec((TM, N), lambda i: (i, 0)),
        compiler_params=pltpu.CompilerParams(dimension_semantics=("parallel",)),
    )(x, lnw.reshape(1, H), lnb.reshape(1, H), w, b.reshape(1, N))


def _linear_res_kernel(x_ref, w_ref, r_ref, o_ref):
    y = jnp.dot(x_ref[...].astype(jnp.bfloat16), w_ref[...],
                preferred_element_type=jnp.float32)
    o_ref[...] = (y + r_ref[...].astype(jnp.float32)).astype(o_ref.dtype)


def _linear_res_bias_kernel(x_ref, w_ref, b_ref, r_ref, o_ref):
    y = (jnp.dot(x_ref[...].astype(jnp.bfloat16), w_ref[...],
                 preferred_element_type=jnp.float32) + b_ref[...])
    o_ref[...] = (y + r_ref[...].astype(jnp.float32)).astype(o_ref.dtype)


def linear_residual(x, w, residual, b=None):
    # out = residual + x @ w (+ b)
    M, K = x.shape
    N = w.shape[1]
    TM, nm = _m_tiling(M)
    x_spec = pl.BlockSpec((TM, K), lambda i: (i, 0))
    w_spec = pl.BlockSpec((K, N), lambda i: (0, 0))
    r_spec = pl.BlockSpec((TM, N), lambda i: (i, 0))
    o_spec = pl.BlockSpec((TM, N), lambda i: (i, 0))
    cp = pltpu.CompilerParams(dimension_semantics=("parallel",))
    if b is None:
        return pl.pallas_call(
            _linear_res_kernel,
            out_shape=jax.ShapeDtypeStruct((M, N), jnp.bfloat16),
            grid=(nm,), in_specs=[x_spec, w_spec, r_spec], out_specs=o_spec,
            compiler_params=cp,
        )(x, w, residual)
    return pl.pallas_call(
        _linear_res_bias_kernel,
        out_shape=jax.ShapeDtypeStruct((M, N), jnp.bfloat16),
        grid=(nm,),
        in_specs=[x_spec, w_spec, pl.BlockSpec((1, N), lambda i: (0, 0)), r_spec],
        out_specs=o_spec,
        compiler_params=cp,
    )(x, w, b.reshape(1, N), residual)


def _mlp_kernel(x_ref, lnw_ref, lnb_ref, w1_ref, w2_ref, o_ref, *, eps, inter):
    # out = x + fc2( y * silu(gate) ), [gate | y] = ln(x) @ w1  (single wide dot)
    x = x_ref[...].astype(jnp.float32)
    mu = jnp.mean(x, axis=-1, keepdims=True)
    xc = x - mu
    var = jnp.mean(xc * xc, axis=-1, keepdims=True)
    hn = (xc * lax.rsqrt(var + eps) * lnw_ref[...] + lnb_ref[...]).astype(jnp.bfloat16)
    z = jnp.dot(hn, w1_ref[...], preferred_element_type=jnp.float32)
    gate = z[:, :inter]
    y = z[:, inter:]
    t = (y * (gate * jax.nn.sigmoid(gate))).astype(jnp.bfloat16)
    out = x + jnp.dot(t, w2_ref[...], preferred_element_type=jnp.float32)
    o_ref[...] = out.astype(o_ref.dtype)


def mlp_block(x, lp):
    B_, S_, H_ = x.shape
    xf = x.reshape(-1, H_)
    M = xf.shape[0]
    I = Cfg.intermediate_size
    TM, nm = _m_tiling(M)
    out = pl.pallas_call(
        functools.partial(_mlp_kernel, eps=Cfg.layer_norm_eps, inter=I),
        out_shape=jax.ShapeDtypeStruct((M, H_), jnp.bfloat16),
        grid=(nm,),
        in_specs=[
            pl.BlockSpec((TM, H_), lambda i: (i, 0)),
            pl.BlockSpec((1, H_), lambda i: (0, 0)),
            pl.BlockSpec((1, H_), lambda i: (0, 0)),
            pl.BlockSpec((H_, 2 * I), lambda i: (0, 0)),
            pl.BlockSpec((I, H_), lambda i: (0, 0)),
        ],
        out_specs=pl.BlockSpec((TM, H_), lambda i: (i, 0)),
        compiler_params=pltpu.CompilerParams(dimension_semantics=("parallel",)),
    )(xf, lp['ln2_w'].reshape(1, H_), lp['ln2_b'].reshape(1, H_),
      lp['fc1_w'], lp['fc2_w'])
    return out.reshape(B_, S_, H_)


def _yoco_cross_kernel(x_ref, lnw_ref, lnb_ref, win_ref, ssm_ref, wout_ref, o_ref,
                       *, eps):
    # out = x + out_proj( yoco_kv * silu( in_proj( ln(x) ) ) )
    x = x_ref[...].astype(jnp.float32)
    mu = jnp.mean(x, axis=-1, keepdims=True)
    xc = x - mu
    var = jnp.mean(xc * xc, axis=-1, keepdims=True)
    hn = (xc * lax.rsqrt(var + eps) * lnw_ref[...] + lnb_ref[...]).astype(jnp.bfloat16)
    u = jnp.dot(hn, win_ref[...], preferred_element_type=jnp.float32)
    t = (ssm_ref[...].astype(jnp.float32) * (u * jax.nn.sigmoid(u))).astype(jnp.bfloat16)
    out = x + jnp.dot(t, wout_ref[...], preferred_element_type=jnp.float32)
    o_ref[...] = out.astype(o_ref.dtype)


def yoco_cross_mamba(xf, lnw, lnb, win, ssm, wout):
    M, H_ = xf.shape
    C = win.shape[1]
    TM, nm = _m_tiling(M)
    return pl.pallas_call(
        functools.partial(_yoco_cross_kernel, eps=Cfg.layer_norm_eps),
        out_shape=jax.ShapeDtypeStruct((M, H_), jnp.bfloat16),
        grid=(nm,),
        in_specs=[
            pl.BlockSpec((TM, H_), lambda i: (i, 0)),
            pl.BlockSpec((1, H_), lambda i: (0, 0)),
            pl.BlockSpec((1, H_), lambda i: (0, 0)),
            pl.BlockSpec((H_, C), lambda i: (0, 0)),
            pl.BlockSpec((TM, C), lambda i: (i, 0)),
            pl.BlockSpec((C, H_), lambda i: (0, 0)),
        ],
        out_specs=pl.BlockSpec((TM, H_), lambda i: (i, 0)),
        compiler_params=pltpu.CompilerParams(dimension_semantics=("parallel",)),
    )(xf, lnw.reshape(1, H_), lnb.reshape(1, H_), win, ssm, wout)


def _layernorm_kernel(x_ref, w_ref, b_ref, o_ref, *, eps):
    x = x_ref[...].astype(jnp.float32)
    mu = jnp.mean(x, axis=-1, keepdims=True)
    xc = x - mu
    var = jnp.mean(xc * xc, axis=-1, keepdims=True)
    o_ref[...] = xc * lax.rsqrt(var + eps) * w_ref[...] + b_ref[...]


def layernorm2d(x, w, b):
    M, H_ = x.shape
    TM, nm = _m_tiling(M)
    return pl.pallas_call(
        functools.partial(_layernorm_kernel, eps=Cfg.layer_norm_eps),
        out_shape=jax.ShapeDtypeStruct((M, H_), jnp.float32),
        grid=(nm,),
        in_specs=[
            pl.BlockSpec((TM, H_), lambda i: (i, 0)),
            pl.BlockSpec((1, H_), lambda i: (0, 0)),
            pl.BlockSpec((1, H_), lambda i: (0, 0)),
        ],
        out_specs=pl.BlockSpec((TM, H_), lambda i: (i, 0)),
        compiler_params=pltpu.CompilerParams(dimension_semantics=("parallel",)),
    )(x, w.reshape(1, H_), b.reshape(1, H_))


# =============================== mamba pre-processing ===============================
def _mamba_pre_kernel(x_ref, lnw_ref, lnb_ref, win_ref, convw_ref, convb_ref,
                      wdelta_ref, wbc_ref,
                      u_ref, gate_ref, delta_ref, bc_ref, *, eps, d_conv, d_inner):
    x = x_ref[0].astype(jnp.float32)                         # (S, H)
    S = x.shape[0]
    mu = jnp.mean(x, axis=-1, keepdims=True)
    xc = x - mu
    var = jnp.mean(xc * xc, axis=-1, keepdims=True)
    hn = (xc * lax.rsqrt(var + eps) * lnw_ref[...] + lnb_ref[...]).astype(jnp.bfloat16)

    # fused in_proj: [x | gate] in one wide lane-dense MXU dot, 128-aligned split
    xz = jnp.dot(hn, win_ref[...], preferred_element_type=jnp.float32)   # (S, 2C)
    xpart = xz[:, :d_inner]
    gate = xz[:, d_inner:]
    gate_ref[0] = gate.astype(gate_ref.dtype)

    # causal depthwise conv via sublane rolls + iota masks (no padded VMEM scratch)
    row = lax.broadcasted_iota(jnp.int32, (S, 1), 0)
    acc = jnp.zeros_like(xpart)
    for j in range(d_conv):                                   # static taps
        s = d_conv - 1 - j
        if s == 0:
            shifted = xpart
        else:
            shifted = jnp.where(row >= s, pltpu.roll(xpart, s, axis=0), 0.0)
        acc = acc + shifted * convw_ref[j, :]
    acc = acc + convb_ref[...]
    u = acc * jax.nn.sigmoid(acc)                             # silu
    u_ref[0] = u.astype(u_ref.dtype)

    # fused x_proj / dt_proj: delta = u @ (Wdt @ Wdtproj); [B|C] = u @ Wbc
    ub = u.astype(jnp.bfloat16)
    delta_ref[0] = jnp.dot(ub, wdelta_ref[...],
                           preferred_element_type=jnp.float32).astype(delta_ref.dtype)
    bc_ref[0] = jnp.dot(ub, wbc_ref[...],
                        preferred_element_type=jnp.float32).astype(bc_ref.dtype)


def mamba_pre(x, lp):
    B_, S_, H_ = x.shape
    C = D_INNER
    ds = Cfg.d_state
    return pl.pallas_call(
        functools.partial(_mamba_pre_kernel, eps=Cfg.layer_norm_eps,
                          d_conv=Cfg.d_conv, d_inner=C),
        out_shape=(
            jax.ShapeDtypeStruct((B_, S_, C), jnp.bfloat16),      # u (conv+silu)
            jax.ShapeDtypeStruct((B_, S_, C), jnp.bfloat16),      # gate
            jax.ShapeDtypeStruct((B_, S_, C), jnp.bfloat16),      # delta (pre-bias)
            jax.ShapeDtypeStruct((B_, S_, 2 * ds), jnp.bfloat16), # [B | C]
        ),
        grid=(B_,),
        in_specs=[
            pl.BlockSpec((1, S_, H_), lambda b: (b, 0, 0)),
            pl.BlockSpec((1, H_), lambda b: (0, 0)),
            pl.BlockSpec((1, H_), lambda b: (0, 0)),
            pl.BlockSpec((H_, 2 * C), lambda b: (0, 0)),
            pl.BlockSpec((Cfg.d_conv, C), lambda b: (0, 0)),
            pl.BlockSpec((1, C), lambda b: (0, 0)),
            pl.BlockSpec((C, C), lambda b: (0, 0)),
            pl.BlockSpec((C, 2 * ds), lambda b: (0, 0)),
        ],
        out_specs=(
            pl.BlockSpec((1, S_, C), lambda b: (b, 0, 0)),
            pl.BlockSpec((1, S_, C), lambda b: (b, 0, 0)),
            pl.BlockSpec((1, S_, C), lambda b: (b, 0, 0)),
            pl.BlockSpec((1, S_, 2 * ds), lambda b: (b, 0, 0)),
        ),
        compiler_params=pltpu.CompilerParams(dimension_semantics=("parallel",)),
    )(x, lp['ln1_w'].reshape(1, H_), lp['ln1_b'].reshape(1, H_),
      lp['in_proj_w'], lp['conv_w'], lp['conv_b'], lp['delta_w'], lp['bc_w'])


# =============================== selective scan ======================================
def _scan_kernel(u_ref, delta_ref, gate_ref, bc_ref, AT_ref, D_ref, dtb_ref,
                 yraw_ref, ygated_ref, *, d_state, chunk):
    S = u_ref.shape[1]
    CB = u_ref.shape[2]
    a_t = AT_ref[...]                               # (ds, CB) f32
    dtb = dtb_ref[...]                              # (1, CB)
    dskip = D_ref[...]                              # (1, CB)
    nchunks = S // chunk

    def chunk_step(c, xstate):                      # xstate: (ds, CB) f32
        base = pl.multiple_of(c * chunk, chunk)
        # hoisted, dense per-slab math (softplus / delta*u outside the recurrence)
        d_sl = jax.nn.softplus(
            delta_ref[0, pl.ds(base, chunk), :].astype(jnp.float32) + dtb)
        u_sl = u_ref[0, pl.ds(base, chunk), :].astype(jnp.float32)
        du_sl = d_sl * u_sl
        bc_sl = bc_ref[0, pl.ds(base, chunk), :].astype(jnp.float32)   # (chunk, 2ds)
        bT = jnp.transpose(bc_sl[:, :d_state])      # (ds, chunk)
        cT = jnp.transpose(bc_sl[:, d_state:])      # (ds, chunk)
        g_sl = gate_ref[0, pl.ds(base, chunk), :].astype(jnp.float32)

        rows = []
        for i in range(chunk):                      # unrolled recurrence
            dA = jnp.exp(d_sl[i:i + 1, :] * a_t)                 # (ds, CB)
            dBu = bT[:, i:i + 1] * du_sl[i:i + 1, :]             # (ds, CB)
            xstate = dA * xstate + dBu
            y_i = jnp.sum(cT[:, i:i + 1] * xstate, axis=0, keepdims=True)  # (1, CB)
            rows.append(y_i)
        y = jnp.concatenate(rows, axis=0) + u_sl * dskip         # (chunk, CB)
        yraw_ref[0, pl.ds(base, chunk), :] = y.astype(yraw_ref.dtype)
        yg = y * (g_sl * jax.nn.sigmoid(g_sl))
        ygated_ref[0, pl.ds(base, chunk), :] = yg.astype(ygated_ref.dtype)
        return xstate

    x0 = jnp.zeros((d_state, CB), jnp.float32)
    lax.fori_loop(0, nchunks, chunk_step, x0, unroll=True)


def selective_scan(u, delta, gate, bc, A_T, Dskip, dt_bias):
    B_, S_, C = u.shape
    ds = Cfg.d_state
    CB = 128 if C % 128 == 0 else C
    nC = C // CB
    chunk = 8 if S_ % 8 == 0 else (4 if S_ % 4 == 0 else 1)
    blk3 = lambda b, c: (b, 0, c)
    return pl.pallas_call(
        functools.partial(_scan_kernel, d_state=ds, chunk=chunk),
        out_shape=(jax.ShapeDtypeStruct((B_, S_, C), jnp.bfloat16),    # y (pre-gate)
                   jax.ShapeDtypeStruct((B_, S_, C), jnp.bfloat16)),   # y * silu(gate)
        grid=(B_, nC),
        in_specs=[
            pl.BlockSpec((1, S_, CB), blk3),                    # u
            pl.BlockSpec((1, S_, CB), blk3),                    # delta
            pl.BlockSpec((1, S_, CB), blk3),                    # gate
            pl.BlockSpec((1, S_, 2 * ds), lambda b, c: (b, 0, 0)),  # [B | C]
            pl.BlockSpec((ds, CB), lambda b, c: (0, c)),        # A^T
            pl.BlockSpec((1, CB), lambda b, c: (0, c)),         # D skip
            pl.BlockSpec((1, CB), lambda b, c: (0, c)),         # dt bias
        ],
        out_specs=(pl.BlockSpec((1, S_, CB), blk3),
                   pl.BlockSpec((1, S_, CB), blk3)),
        compiler_params=pltpu.CompilerParams(
            dimension_semantics=("parallel", "parallel")),
    )(u, delta, gate, bc, A_T, Dskip, dt_bias)


# =============================== differential flash attention =======================
def _diff_attn_kernel(scal_ref, q_ref, k_ref, v_ref, subw_ref, o_ref,
                      m_scr, l_scr, acc_scr,
                      *, scale, window, subln_eps, TQ, TK):
    qi = pl.program_id(1)
    kj = pl.program_id(2)
    nk = pl.num_programs(2)
    DH = v_ref.shape[1]
    D2 = v_ref.shape[3]

    @pl.when(kj == 0)
    def _():
        m_scr[...] = jnp.full_like(m_scr, NEG_INF)
        l_scr[...] = jnp.zeros_like(l_scr)
        acc_scr[...] = jnp.zeros_like(acc_scr)

    q_lo = qi * TQ
    k_lo = kj * TK
    live = k_lo <= q_lo + (TQ - 1)                            # causal overlap
    if window is not None:                                    # sliding-window overlap
        live = jnp.logical_and(live, q_lo - (k_lo + TK - 1) < window)

    @pl.when(live)
    def _():
        # both differential maps stacked on the head axis: g = map*DH + head
        q = q_ref[0].reshape(2 * DH, TQ, -1).astype(jnp.bfloat16)
        k = k_ref[0].reshape(2 * DH, TK, -1).astype(jnp.bfloat16)
        v = v_ref[0].astype(jnp.bfloat16)                     # (DH, TK, 2D)
        s = jnp.einsum('gqd,gkd->gqk', q, k,
                       preferred_element_type=jnp.float32) * scale
        qpos = q_lo + lax.broadcasted_iota(jnp.int32, (TQ, TK), 0)
        kpos = k_lo + lax.broadcasted_iota(jnp.int32, (TQ, TK), 1)
        ok = kpos <= qpos
        if window is not None:
            ok = jnp.logical_and(ok, (qpos - kpos) < window)
        s = s + jnp.where(ok, 0.0, NEG_INF)[None]

        m_prev = m_scr[...]
        m_new = jnp.maximum(m_prev, s.max(axis=-1, keepdims=True))
        alpha = jnp.exp(m_prev - m_new)
        p = jnp.exp(s - m_new)
        l_scr[...] = alpha * l_scr[...] + p.sum(axis=-1, keepdims=True)
        vv = jnp.concatenate([v, v], axis=0)                  # (2DH, TK, 2D)
        acc_scr[...] = alpha * acc_scr[...] + jnp.einsum(
            'gqk,gkd->gqd', p.astype(jnp.bfloat16), vv,
            preferred_element_type=jnp.float32)
        m_scr[...] = m_new

    @pl.when(kj == nk - 1)
    def _():
        lam_full = scal_ref[0, 0]
        one_minus_li = scal_ref[0, 1]
        o = acc_scr[...] * pl.reciprocal(l_scr[...], approx=True)   # (2DH, TQ, 2D)
        od = o[:DH] - lam_full * o[DH:]                             # (DH, TQ, 2D)
        ms = jnp.mean(od * od, axis=-1, keepdims=True)
        od = od * lax.rsqrt(ms + subln_eps) * subw_ref[...]         # sub RMSNorm
        od = od * one_minus_li
        for h in range(DH):                                   # static lane-offset stores
            o_ref[0, :, h * D2:(h + 1) * D2] = od[h].astype(o_ref.dtype)


def diff_attention(q, k, v, lp):
    B_, S_, _ = q.shape
    H = Cfg.num_attention_heads
    D = HEAD_DIM
    DH = H // 2
    KV_DH = Cfg.num_key_value_heads // 2
    # TODO(synk): GQA (KV heads < Q heads) would share KV blocks via index_map.
    assert KV_DH == DH

    # map-major head layout, built with one fused slice+reshape+transpose per tensor
    qm = q.reshape(B_, S_, DH, 2, D).transpose(0, 3, 2, 1, 4)   # (B, 2, DH, S, D)
    km = k.reshape(B_, S_, DH, 2, D).transpose(0, 3, 2, 1, 4)   # (B, 2, DH, S, D)
    vm = v.reshape(B_, S_, DH, 2 * D).transpose(0, 2, 1, 3)     # (B, DH, S, 2D)

    lam1 = jnp.exp(jnp.sum(lp['lambda_q1'] * lp['lambda_k1']))
    lam2 = jnp.exp(jnp.sum(lp['lambda_q2'] * lp['lambda_k2']))
    lam_full = lam1 - lam2 + jnp.float32(lp['lambda_init'])
    scal = jnp.stack([lam_full, jnp.float32(1.0 - lp['lambda_init'])]
                     ).reshape(1, 2).astype(jnp.float32)

    TQ = S_ if S_ <= 256 else 256
    TK = S_ if S_ <= 128 else 128
    assert S_ % TQ == 0 and S_ % TK == 0
    NQ = S_ // TQ
    NK = S_ // TK
    out = pl.pallas_call(
        functools.partial(_diff_attn_kernel, scale=D ** -0.5,
                          window=lp['window'], subln_eps=1e-5, TQ=TQ, TK=TK),
        out_shape=jax.ShapeDtypeStruct((B_, S_, DH * 2 * D), jnp.bfloat16),
        grid=(B_, NQ, NK),
        in_specs=[
            pl.BlockSpec(memory_space=pltpu.MemorySpace.SMEM),                 # scalars
            pl.BlockSpec((1, 2, DH, TQ, D), lambda b, qi, kj: (b, 0, 0, qi, 0)),
            pl.BlockSpec((1, 2, DH, TK, D), lambda b, qi, kj: (b, 0, 0, kj, 0)),
            pl.BlockSpec((1, DH, TK, 2 * D), lambda b, qi, kj: (b, 0, kj, 0)),
            pl.BlockSpec((1, 2 * D), lambda b, qi, kj: (0, 0)),                # subln w
        ],
        out_specs=pl.BlockSpec((1, TQ, DH * 2 * D), lambda b, qi, kj: (b, qi, 0)),
        scratch_shapes=[pltpu.VMEM((2 * DH, TQ, 1), jnp.float32),
                        pltpu.VMEM((2 * DH, TQ, 1), jnp.float32),
                        pltpu.VMEM((2 * DH, TQ, 2 * D), jnp.float32)],
        compiler_params=pltpu.CompilerParams(
            dimension_semantics=("parallel", "parallel", "arbitrary")),
    )(scal, qm, km, vm, lp['subln_w'].reshape(1, 2 * D))
    return out.reshape(B_, S_, H * D)


# =============================== layer wrappers ======================================
def mamba_block(x, lp, ssm_out):
    B_, S_, H_ = x.shape
    xf = x.reshape(-1, H_)
    if lp['yoco_cross']:
        out = yoco_cross_mamba(xf, lp['ln1_w'], lp['ln1_b'], lp['in_proj_w'],
                               ssm_out.reshape(-1, D_INNER), lp['out_proj_w'])
        return out.reshape(B_, S_, H_), ssm_out
    u, gate, delta, bc = mamba_pre(x, lp)
    y_raw, y_gated = selective_scan(u, delta, gate, bc, lp['A_T'], lp['D'],
                                    lp['dt_proj_b'])
    if lp['yoco_mb']:
        ssm_out = y_raw                               # yoco_key_values (pre-gate)
    out = linear_residual(y_gated.reshape(-1, D_INNER), lp['out_proj_w'], xf)
    return out.reshape(B_, S_, H_), ssm_out


def attn_block(x, lp, shared_kv):
    B_, S_, H_ = x.shape
    xf = x.reshape(-1, H_)
    HD = Cfg.num_attention_heads * HEAD_DIM
    KVD = Cfg.num_key_value_heads * HEAD_DIM
    proj = ln_linear(xf, lp['ln1_w'], lp['ln1_b'], lp['Wqkv_w'], lp['Wqkv_b'])
    if lp['yoco_cross']:
        q = proj.reshape(B_, S_, HD)
        k, v = shared_kv                              # KV shared from layer n//2+1
    else:
        qkv = proj.reshape(B_, S_, -1)
        q = qkv[..., :HD]
        k = qkv[..., HD:HD + KVD]
        v = qkv[..., HD + KVD:]
        if lp['layer_idx'] == Cfg.num_hidden_layers // 2 + 1:
            shared_kv = (k, v)
    ao = diff_attention(q, k, v, lp)
    out = linear_residual(ao.reshape(-1, HD), lp['attn_out_w'], xf, lp['attn_out_b'])
    return out.reshape(B_, S_, H_), shared_kv


def samba_y_forward(params, input_ids):
    h = jnp.take(params['embed'], input_ids, axis=0).astype(jnp.bfloat16)  # (B,S,H)
    ssm_out = None
    shared_kv = None
    for lp in params['layers']:
        if lp['use_mamba']:
            h, ssm_out = mamba_block(h, lp, ssm_out)
        else:
            h, shared_kv = attn_block(h, lp, shared_kv)
        # TODO(synk): vLLM V0 prefill last-token index_select at layer n//2+2 and the
        # KV-cache / mamba-cache paging machinery are serving-time plumbing, omitted.
        h = mlp_block(h, lp)
    B_, S_, H_ = h.shape
    return layernorm2d(h.reshape(-1, H_), params['final_ln_w'],
                       params['final_ln_b']).reshape(B_, S_, H_)


# =============================== parameter init =====================================
def init_params(key):
    cnt = [0]

    def nk():
        cnt[0] += 1
        return jax.random.fold_in(key, cnt[0])

    def nrm(shape, scale=0.02, dtype=jnp.float32):
        return (scale * jax.random.normal(nk(), shape)).astype(dtype)

    H = Cfg.hidden_size
    I = Cfg.intermediate_size
    ds = Cfg.d_state
    P = {'embed': nrm((Cfg.vocab_size, H))}
    layers = []
    half = Cfg.num_hidden_layers // 2
    for i in range(Cfg.num_hidden_layers):
        yoco_mb = i >= half
        yoco_cross = i >= half + 2
        use_mamba = Cfg.mb_per_layer > 0 and i % Cfg.mb_per_layer == 0
        lp = dict(layer_idx=i, yoco_mb=yoco_mb, yoco_cross=yoco_cross,
                  use_mamba=use_mamba)
        lp['ln1_w'] = jnp.ones((H,), jnp.float32)
        lp['ln1_b'] = jnp.zeros((H,), jnp.float32)
        lp['ln2_w'] = jnp.ones((H,), jnp.float32)
        lp['ln2_b'] = jnp.zeros((H,), jnp.float32)
        # SambaYMLP fc1 fused: columns [gate | y]
        lp['fc1_w'] = nrm((H, 2 * I), dtype=jnp.bfloat16)
        lp['fc2_w'] = nrm((I, H), dtype=jnp.bfloat16)
        if use_mamba:
            if yoco_cross:
                lp['in_proj_w'] = nrm((H, D_INNER), dtype=jnp.bfloat16)
                lp['out_proj_w'] = nrm((D_INNER, H), dtype=jnp.bfloat16)
            else:
                # fused in_proj: columns [x | gate]
                lp['in_proj_w'] = nrm((H, 2 * D_INNER), dtype=jnp.bfloat16)
                lp['conv_w'] = nrm((Cfg.d_conv, D_INNER), 0.1)
                lp['conv_b'] = jnp.zeros((1, D_INNER), jnp.float32)
                # dt path folded: delta_w = x_proj_dt_w @ dt_proj_w (exact refactor)
                x_proj_dt_w = nrm((D_INNER, DT_RANK))
                dt_proj_w = nrm((DT_RANK, D_INNER), 0.1)
                lp['delta_w'] = (x_proj_dt_w @ dt_proj_w).astype(jnp.bfloat16)
                # fused x_proj B / C: columns [B | C]
                lp['bc_w'] = jnp.concatenate(
                    [nrm((D_INNER, ds)), nrm((D_INNER, ds))],
                    axis=1).astype(jnp.bfloat16)
                lp['dt_proj_b'] = jnp.full((1, D_INNER), -4.0, jnp.float32)
                lp['A_T'] = -jnp.broadcast_to(
                    jnp.arange(1, ds + 1, dtype=jnp.float32)[:, None],
                    (ds, D_INNER)).astype(jnp.float32)
                lp['D'] = jnp.ones((1, D_INNER), jnp.float32)
                lp['out_proj_w'] = nrm((D_INNER, H), dtype=jnp.bfloat16)
        else:
            if yoco_cross:
                op = Cfg.num_attention_heads * HEAD_DIM
            else:
                op = (Cfg.num_attention_heads * HEAD_DIM
                      + 2 * Cfg.num_key_value_heads * HEAD_DIM)
            lp['Wqkv_w'] = nrm((H, op), dtype=jnp.bfloat16)
            lp['Wqkv_b'] = jnp.zeros((op,), jnp.float32)
            lp['attn_out_w'] = nrm((Cfg.num_attention_heads * HEAD_DIM, H),
                                   dtype=jnp.bfloat16)
            lp['attn_out_b'] = jnp.zeros((H,), jnp.float32)
            lp['lambda_q1'] = nrm((HEAD_DIM,), 0.1)
            lp['lambda_k1'] = nrm((HEAD_DIM,), 0.1)
            lp['lambda_q2'] = nrm((HEAD_DIM,), 0.1)
            lp['lambda_k2'] = nrm((HEAD_DIM,), 0.1)
            lp['subln_w'] = jnp.ones((2 * HEAD_DIM,), jnp.float32)
            lp['lambda_init'] = 0.8 - 0.6 * math.exp(-0.3 * i)
            lp['window'] = Cfg.sliding_window if i < half else None
        layers.append(lp)
    P['layers'] = layers
    P['final_ln_w'] = jnp.ones((H,), jnp.float32)
    P['final_ln_b'] = jnp.zeros((H,), jnp.float32)
    return P


# =============================== main ================================================
if __name__ == "__main__":
    key = jax.random.PRNGKey(0)
    params = init_params(jax.random.fold_in(key, 1))
    B, S = 2, 16
    input_ids = jax.random.randint(jax.random.fold_in(key, 2), (B, S), 0,
                                   Cfg.vocab_size, dtype=jnp.int32)
    out = samba_y_forward(params, input_ids)
    out = jax.block_until_ready(out)
    assert out.shape == (B, S, Cfg.hidden_size)
    assert bool(jnp.all(jnp.isfinite(out)))
    print("KERNEL_OK")
</pallas_src>

<mosaic_0001>
module attributes {stable_mosaic.version = 11 : i64} {
  func.func @_mamba_pre_kernel(%arg0: i32, %arg1: memref<1x16x64xbf16, #tpu.memory_space<vmem>>, %arg2: memref<1x64xf32, #tpu.memory_space<vmem>>, %arg3: memref<1x64xf32, #tpu.memory_space<vmem>>, %arg4: memref<64x256xbf16, #tpu.memory_space<vmem>>, %arg5: memref<4x128xf32, #tpu.memory_space<vmem>>, %arg6: memref<1x128xf32, #tpu.memory_space<vmem>>, %arg7: memref<128x128xbf16, #tpu.memory_space<vmem>>, %arg8: memref<128x32xbf16, #tpu.memory_space<vmem>>, %arg9: memref<1x16x128xbf16, #tpu.memory_space<vmem>>, %arg10: memref<1x16x128xbf16, #tpu.memory_space<vmem>>, %arg11: memref<1x16x128xbf16, #tpu.memory_space<vmem>>, %arg12: memref<1x16x32xbf16, #tpu.memory_space<vmem>>) attributes {dimension_semantics = [#tpu.dimension_semantics<parallel>], iteration_bounds = array<i64: 2>, scalar_prefetch = 0 : i64, scratch_operands = 0 : i64, tpu.core_type = #tpu.core_type<tc>, window_params = [{transform_indices = @transform_0, window_bounds = array<i64: 1, 16, 64>}, {pipeline_mode = #tpu.pipeline_mode<synchronous>, transform_indices = @transform_1, window_bounds = array<i64: 1, 64>}, {pipeline_mode = #tpu.pipeline_mode<synchronous>, transform_indices = @transform_2, window_bounds = array<i64: 1, 64>}, {pipeline_mode = #tpu.pipeline_mode<synchronous>, transform_indices = @transform_3, window_bounds = array<i64: 64, 256>}, {pipeline_mode = #tpu.pipeline_mode<synchronous>, transform_indices = @transform_4, window_bounds = array<i64: 4, 128>}, {pipeline_mode = #tpu.pipeline_mode<synchronous>, transform_indices = @transform_5, window_bounds = array<i64: 1, 128>}, {pipeline_mode = #tpu.pipeline_mode<synchronous>, transform_indices = @transform_6, window_bounds = array<i64: 128, 128>}, {pipeline_mode = #tpu.pipeline_mode<synchronous>, transform_indices = @transform_7, window_bounds = array<i64: 128, 32>}, {transform_indices = @transform_8, window_bounds = array<i64: 1, 16, 128>}, {transform_indices = @transform_9, window_bounds = array<i64: 1, 16, 128>}, {transform_indices = @transform_10, window_bounds = array<i64: 1, 16, 128>}, {transform_indices = @transform_11, window_bounds = array<i64: 1, 16, 32>}]} {
    %c0 = arith.constant 0 : index
    %c0_0 = arith.constant 0 : index
    %c0_1 = arith.constant 0 : index
    %0 = vector.load %arg1[%c0, %c0_0, %c0_1] : memref<1x16x64xbf16, #tpu.memory_space<vmem>>, vector<1x16x64xbf16>
    %1 = vector.shape_cast %0 : vector<1x16x64xbf16> to vector<16x64xbf16>
    %2 = arith.extf %1 : vector<16x64xbf16> to vector<16x64xf32>
    %cst = arith.constant dense<0.000000e+00> : vector<16xf32>
    %3 = vector.multi_reduction <add>, %2, %cst [1] : vector<16x64xf32> to vector<16xf32>
    %4 = vector.shape_cast %3 : vector<16xf32> to vector<16x1xf32>
    %cst_2 = arith.constant 6.400000e+01 : f32
    %5 = vector.broadcast %cst_2 : f32 to vector<16x1xf32>
    %6 = arith.divf %4, %5 : vector<16x1xf32>
    %7 = vector.broadcast %6 : vector<16x1xf32> to vector<16x64xf32>
    %8 = arith.subf %2, %7 : vector<16x64xf32>
    %9 = arith.mulf %8, %8 : vector<16x64xf32>
    %cst_3 = arith.constant dense<0.000000e+00> : vector<16xf32>
    %10 = vector.multi_reduction <add>, %9, %cst_3 [1] : vector<16x64xf32> to vector<16xf32>
    %11 = vector.shape_cast %10 : vector<16xf32> to vector<16x1xf32>
    %cst_4 = arith.constant 6.400000e+01 : f32
    %12 = vector.broadcast %cst_4 : f32 to vector<16x1xf32>
    %13 = arith.divf %11, %12 : vector<16x1xf32>
    %cst_5 = arith.constant 9.99999974E-6 : f32
    %14 = vector.broadcast %cst_5 : f32 to vector<16x1xf32>
    %15 = arith.addf %13, %14 : vector<16x1xf32>
    %16 = math.rsqrt %15 : vector<16x1xf32>
    %17 = vector.broadcast %16 : vector<16x1xf32> to vector<16x64xf32>
    %18 = arith.mulf %8, %17 : vector<16x64xf32>
    %c0_6 = arith.constant 0 : index
    %c0_7 = arith.constant 0 : index
    %19 = vector.load %arg2[%c0_6, %c0_7] : memref<1x64xf32, #tpu.memory_space<vmem>>, vector<1x64xf32>
    %20 = vector.broadcast %19 : vector<1x64xf32> to vector<16x64xf32>
    %21 = arith.mulf %18, %20 : vector<16x64xf32>
    %c0_8 = arith.constant 0 : index
    %c0_9 = arith.constant 0 : index
    %22 = vector.load %arg3[%c0_8, %c0_9] : memref<1x64xf32, #tpu.memory_space<vmem>>, vector<1x64xf32>
    %23 = vector.broadcast %22 : vector<1x64xf32> to vector<16x64xf32>
    %24 = arith.addf %21, %23 : vector<16x64xf32>
    %25 = arith.truncf %24 : vector<16x64xf32> to vector<16x64xbf16>
    %c0_10 = arith.constant 0 : index
    %c0_11 = arith.constant 0 : index
    %26 = vector.load %arg4[%c0_10, %c0_11] : memref<64x256xbf16, #tpu.memory_space<vmem>>, vector<64x256xbf16>
    %cst_12 = arith.constant dense<0.000000e+00> : vector<16x256xf32>
    %27 = tpu.matmul %25, %26, %cst_12 {dimension_numbers = #tpu.dot_dimension_numbers<[1], [0], [0], [1], [0, 0, 1, 1], [], []>} : vector<16x64xbf16>, vector<64x256xbf16>, vector<16x256xf32> -> vector<16x256xf32>
    %28 = vector.extract_strided_slice %27 {offsets = [0, 0], sizes = [16, 128], strides = [1, 1]} : vector<16x256xf32> to vector<16x128xf32>
    %29 = vector.extract_strided_slice %27 {offsets = [0, 128], sizes = [16, 128], strides = [1, 1]} : vector<16x256xf32> to vector<16x128xf32>
    %30 = arith.truncf %29 : vector<16x128xf32> to vector<16x128xbf16>
    %c0_13 = arith.constant 0 : index
    %c0_14 = arith.constant 0 : index
    %c0_15 = arith.constant 0 : index
    %31 = vector.load %arg10[%c0_13, %c0_14, %c0_15] : memref<1x16x128xbf16, #tpu.memory_space<vmem>>, vector<1x16x128xbf16>
    %32 = vector.shape_cast %31 : vector<1x16x128xbf16> to vector<16x128xbf16>
    %33 = vector.shape_cast %30 : vector<16x128xbf16> to vector<1x16x128xbf16>
    tpu.vector_store %arg10[%c0_13, %c0_14, %c0_15], %33 {strides = array<i32>} : memref<1x16x128xbf16, #tpu.memory_space<vmem>>, vector<1x16x128xbf16>,
    %34 = tpu.iota {dimensions = array<i32: 0>} : vector<16x1xi32>
    %cst_16 = arith.constant 0.000000e+00 : f32
    %35 = vector.broadcast %cst_16 : f32 to vector<16x128xf32>
    %c3_i32 = arith.constant 3 : i32
    %36 = vector.broadcast %c3_i32 : i32 to vector<16x1xi32>
    %37 = arith.cmpi sge, %34, %36 : vector<16x1xi32>
    %c3_i32_17 = arith.constant 3 : i32
    %38 = tpu.dynamic_rotate %28 by %c3_i32_17 dim 0 : vector<16x128xf32>, i32 -> vector<16x128xf32>
    %cst_18 = arith.constant 0.000000e+00 : f32
    %39 = vector.shape_cast %37 : vector<16x1xi1> to vector<16x1xi1>
    %40 = vector.broadcast %39 : vector<16x1xi1> to vector<16x128xi1>
    %41 = vector.broadcast %cst_18 : f32 to vector<16x128xf32>
    %42 = arith.select %40, %38, %41 : vector<16x128xi1>, vector<16x128xf32>
    %c0_19 = arith.constant 0 : index
    %c0_20 = arith.constant 0 : index
    %43 = vector.load %arg5[%c0_19, %c0_20] : memref<4x128xf32, #tpu.memory_space<vmem>>, vector<1x128xf32>
    %44 = vector.shape_cast %43 : vector<1x128xf32> to vector<128xf32>
    %45 = vector.shape_cast %44 : vector<128xf32> to vector<1x128xf32>
    %46 = vector.broadcast %45 : vector<1x128xf32> to vector<16x128xf32>
    %47 = arith.mulf %42, %46 : vector<16x128xf32>
    %48 = arith.addf %35, %47 : vector<16x128xf32>
    %c2_i32 = arith.constant 2 : i32
    %49 = vector.broadcast %c2_i32 : i32 to vector<16x1xi32>
    %50 = arith.cmpi sge, %34, %49 : vector<16x1xi32>
    %c2_i32_21 = arith.constant 2 : i32
    %51 = tpu.dynamic_rotate %28 by %c2_i32_21 dim 0 : vector<16x128xf32>, i32 -> vector<16x128xf32>
    %cst_22 = arith.constant 0.000000e+00 : f32
    %52 = vector.shape_cast %50 : vector<16x1xi1> to vector<16x1xi1>
    %53 = vector.broadcast %52 : vector<16x1xi1> to vector<16x128xi1>
    %54 = vector.broadcast %cst_22 : f32 to vector<16x128xf32>
    %55 = arith.select %53, %51, %54 : vector<16x128xi1>, vector<16x128xf32>
    %c1 = arith.constant 1 : index
    %c0_23 = arith.constant 0 : index
    %56 = vector.load %arg5[%c1, %c0_23] : memref<4x128xf32, #tpu.memory_space<vmem>>, vector<1x128xf32>
    %57 = vector.shape_cast %56 : vector<1x128xf32> to vector<128xf32>
    %58 = vector.shape_cast %57 : vector<128xf32> to vector<1x128xf32>
    %59 = vector.broadcast %58 : vector<1x128xf32> to vector<16x128xf32>
    %60 = arith.mulf %55, %59 : vector<16x128xf32>
    %61 = arith.addf %48, %60 : vector<16x128xf32>
    %c1_i32 = arith.constant 1 : i32
    %62 = vector.broadcast %c1_i32 : i32 to vector<16x1xi32>
    %63 = arith.cmpi sge, %34, %62 : vector<16x1xi32>
    %c1_i32_24 = arith.constant 1 : i32
    %64 = tpu.dynamic_rotate %28 by %c1_i32_24 dim 0 : vector<16x128xf32>, i32 -> vector<16x128xf32>
    %cst_25 = arith.constant 0.000000e+00 : f32
    %65 = vector.shape_cast %63 : vector<16x1xi1> to vector<16x1xi1>
    %66 = vector.broadcast %65 : vector<16x1xi1> to vector<16x128xi1>
    %67 = vector.broadcast %cst_25 : f32 to vector<16x128xf32>
    %68 = arith.select %66, %64, %67 : vector<16x128xi1>, vector<16x128xf32>
    %c2 = arith.constant 2 : index
    %c0_26 = arith.constant 0 : index
    %69 = vector.load %arg5[%c2, %c0_26] : memref<4x128xf32, #tpu.memory_space<vmem>>, vector<1x128xf32>
    %70 = vector.shape_cast %69 : vector<1x128xf32> to vector<128xf32>
    %71 = vector.shape_cast %70 : vector<128xf32> to vector<1x128xf32>
    %72 = vector.broadcast %71 : vector<1x128xf32> to vector<16x128xf32>
    %73 = arith.mulf %68, %72 : vector<16x128xf32>
    %74 = arith.addf %61, %73 : vector<16x128xf32>
    %c3 = arith.constant 3 : index
    %c0_27 = arith.constant 0 : index
    %75 = vector.load %arg5[%c3, %c0_27] : memref<4x128xf32, #tpu.memory_space<vmem>>, vector<1x128xf32>
    %76 = vector.shape_cast %75 : vector<1x128xf32> to vector<128xf32>
    %77 = vector.shape_cast %76 : vector<128xf32> to vector<1x128xf32>
    %78 = vector.broadcast %77 : vector<1x128xf32> to vector<16x128xf32>
    %79 = arith.mulf %28, %78 : vector<16x128xf32>
    %80 = arith.addf %74, %79 : vector<16x128xf32>
    %c0_28 = arith.constant 0 : index
    %c0_29 = arith.constant 0 : index
    %81 = vector.load %arg6[%c0_28, %c0_29] : memref<1x128xf32, #tpu.memory_space<vmem>>, vector<1x128xf32>
    %82 = vector.broadcast %81 : vector<1x128xf32> to vector<16x128xf32>
    %83 = arith.addf %80, %82 : vector<16x128xf32>
    %84 = arith.negf %83 : vector<16x128xf32>
    %85 = math.exp %84 : vector<16x128xf32>
    %cst_30 = arith.constant 1.000000e+00 : f32
    %86 = vector.broadcast %cst_30 : f32 to vector<16x128xf32>
    %87 = arith.addf %86, %85 : vector<16x128xf32>
    %88 = arith.divf %86, %87 : vector<16x128xf32>
    %89 = arith.mulf %83, %88 : vector<16x128xf32>
    %90 = arith.truncf %89 : vector<16x128xf32> to vector<16x128xbf16>
    %c0_31 = arith.constant 0 : index
    %c0_32 = arith.constant 0 : index
    %c0_33 = arith.constant 0 : index
    %91 = vector.load %arg9[%c0_31, %c0_32, %c0_33] : memref<1x16x128xbf16, #tpu.memory_space<vmem>>, vector<1x16x128xbf16>
    %92 = vector.shape_cast %91 : vector<1x16x128xbf16> to vector<16x128xbf16>
    %93 = vector.shape_cast %90 : vector<16x128xbf16> to vector<1x16x128xbf16>
    tpu.vector_store %arg9[%c0_31, %c0_32, %c0_33], %93 {strides = array<i32>} : memref<1x16x128xbf16, #tpu.memory_space<vmem>>, vector<1x16x128xbf16>,
    %94 = arith.truncf %89 : vector<16x128xf32> to vector<16x128xbf16>
    %c0_34 = arith.constant 0 : index
    %c0_35 = arith.constant 0 : index
    %95 = vector.load %arg7[%c0_34, %c0_35] : memref<128x128xbf16, #tpu.memory_space<vmem>>, vector<128x128xbf16>
    %cst_36 = arith.constant dense<0.000000e+00> : vector<16x128xf32>
    %96 = tpu.matmul %94, %95, %cst_36 {dimension_numbers = #tpu.dot_dimension_numbers<[1], [0], [0], [1], [0, 0, 1, 1], [], []>} : vector<16x128xbf16>, vector<128x128xbf16>, vector<16x128xf32> -> vector<16x128xf32>
    %97 = arith.truncf %96 : vector<16x128xf32> to vector<16x128xbf16>
    %c0_37 = arith.constant 0 : index
    %c0_38 = arith.constant 0 : index
    %c0_39 = arith.constant 0 : index
    %98 = vector.load %arg11[%c0_37, %c0_38, %c0_39] : memref<1x16x128xbf16, #tpu.memory_space<vmem>>, vector<1x16x128xbf16>
    %99 = vector.shape_cast %98 : vector<1x16x128xbf16> to vector<16x128xbf16>
    %100 = vector.shape_cast %97 : vector<16x128xbf16> to vector<1x16x128xbf16>
    tpu.vector_store %arg11[%c0_37, %c0_38, %c0_39], %100 {strides = array<i32>} : memref<1x16x128xbf16, #tpu.memory_space<vmem>>, vector<1x16x128xbf16>,
    %c0_40 = arith.constant 0 : index
    %c0_41 = arith.constant 0 : index
    %101 = vector.load %arg8[%c0_40, %c0_41] : memref<128x32xbf16, #tpu.memory_space<vmem>>, vector<128x32xbf16>
    %cst_42 = arith.constant dense<0.000000e+00> : vector<16x32xf32>
    %102 = tpu.matmul %94, %101, %cst_42 {dimension_numbers = #tpu.dot_dimension_numbers<[1], [0], [0], [1], [0, 0, 1, 1], [], []>} : vector<16x128xbf16>, vector<128x32xbf16>, vector<16x32xf32> -> vector<16x32xf32>
    %103 = arith.truncf %102 : vector<16x32xf32> to vector<16x32xbf16>
    %c0_43 = arith.constant 0 : index
    %c0_44 = arith.constant 0 : index
    %c0_45 = arith.constant 0 : index
    %104 = vector.load %arg12[%c0_43, %c0_44, %c0_45] : memref<1x16x32xbf16, #tpu.memory_space<vmem>>, vector<1x16x32xbf16>
    %105 = vector.shape_cast %104 : vector<1x16x32xbf16> to vector<16x32xbf16>
    %106 = vector.shape_cast %103 : vector<16x32xbf16> to vector<1x16x32xbf16>
    tpu.vector_store %arg12[%c0_43, %c0_44, %c0_45], %106 {strides = array<i32>} : memref<1x16x32xbf16, #tpu.memory_space<vmem>>, vector<1x16x32xbf16>,
    return
  }
  func.func @transform_0(%arg0: i32) -> (i32, i32, i32) {
    %c0_i32 = arith.constant 0 : i32
    %c0_i32_0 = arith.constant 0 : i32
    %c0_i32_1 = arith.constant 0 : i32
    return %arg0, %c0_i32, %c0_i32_0 : i32, i32, i32
  }
  func.func @transform_1(%arg0: i32) -> (i32, i32) {
    %c0_i32 = arith.constant 0 : i32
    %c0_i32_0 = arith.constant 0 : i32
    %c0_i32_1 = arith.constant 0 : i32
    return %c0_i32, %c0_i32_0 : i32, i32
  }
  func.func @transform_2(%arg0: i32) -> (i32, i32) {
    %c0_i32 = arith.constant 0 : i32
    %c0_i32_0 = arith.constant 0 : i32
    %c0_i32_1 = arith.constant 0 : i32
    return %c0_i32, %c0_i32_0 : i32, i32
  }
  func.func @transform_3(%arg0: i32) -> (i32, i32) {
    %c0_i32 = arith.constant 0 : i32
    %c0_i32_0 = arith.constant 0 : i32
    %c0_i32_1 = arith.constant 0 : i32
    return %c0_i32, %c0_i32_0 : i32, i32
  }
  func.func @transform_4(%arg0: i32) -> (i32, i32) {
    %c0_i32 = arith.constant 0 : i32
    %c0_i32_0 = arith.constant 0 : i32
    %c0_i32_1 = arith.constant 0 : i32
    return %c0_i32, %c0_i32_0 : i32, i32
  }
  func.func @transform_5(%arg0: i32) -> (i32, i32) {
    %c0_i32 = arith.constant 0 : i32
    %c0_i32_0 = arith.constant 0 : i32
    %c0_i32_1 = arith.constant 0 : i32
    return %c0_i32, %c0_i32_0 : i32, i32
  }
  func.func @transform_6(%arg0: i32) -> (i32, i32) {
    %c0_i32 = arith.constant 0 : i32
    %c0_i32_0 = arith.constant 0 : i32
    %c0_i32_1 = arith.constant 0 : i32
    return %c0_i32, %c0_i32_0 : i32, i32
  }
  func.func @transform_7(%arg0: i32) -> (i32, i32) {
    %c0_i32 = arith.constant 0 : i32
    %c0_i32_0 = arith.constant 0 : i32
    %c0_i32_1 = arith.constant 0 : i32
    return %c0_i32, %c0_i32_0 : i32, i32
  }
  func.func @transform_8(%arg0: i32) -> (i32, i32, i32) {
    %c0_i32 = arith.constant 0 : i32
    %c0_i32_0 = arith.constant 0 : i32
    %c0_i32_1 = arith.constant 0 : i32
    return %arg0, %c0_i32, %c0_i32_0 : i32, i32, i32
  }
  func.func @transform_9(%arg0: i32) -> (i32, i32, i32) {
    %c0_i32 = arith.constant 0 : i32
    %c0_i32_0 = arith.constant 0 : i32
    %c0_i32_1 = arith.constant 0 : i32
    return %arg0, %c0_i32, %c0_i32_0 : i32, i32, i32
  }
  func.func @transform_10(%arg0: i32) -> (i32, i32, i32) {
    %c0_i32 = arith.constant 0 : i32
    %c0_i32_0 = arith.constant 0 : i32
    %c0_i32_1 = arith.constant 0 : i32
    return %arg0, %c0_i32, %c0_i32_0 : i32, i32, i32
  }
  func.func @transform_11(%arg0: i32) -> (i32, i32, i32) {
    %c0_i32 = arith.constant 0 : i32
    %c0_i32_0 = arith.constant 0 : i32
    %c0_i32_1 = arith.constant 0 : i32
    return %arg0, %c0_i32, %c0_i32_0 : i32, i32, i32
  }
}

</mosaic_0001>

<bundles_post_ra>
// kernel: tpu_custom_call.1
= control target key start
LH: loop header
LB: loop body
LE: loop exit
PB: predicated region body
PF: predicated region fallthrough
CT: control target
= control target key end

     0   :  { %s2094_s0 = inlined_call_operand.vmem [shape: bf16[2,16,64], index: 0, kind: input, shape index: {}]   ;;  %s2095_s1 = inlined_call_operand.vmem [shape: f32[1,64], index: 1, kind: input, shape index: {}]   ;;  %s2096_s2 = inlined_call_operand.hbm [shape: f32[1,64], index: 2, kind: input, shape index: {}]   ;;  %s2097_s3 = inlined_call_operand.vmem [shape: bf16[64,256], index: 3, kind: input, shape index: {}]   ;;  %s2098_s4 = inlined_call_operand.vmem [shape: f32[4,128], index: 4, kind: input, shape index: {}]   ;;  %s2099_s5 = inlined_call_operand.vmem [shape: f32[1,128], index: 5, kind: input, shape index: {}]   ;;  %s2100_s6 = inlined_call_operand.hbm [shape: bf16[128,128], index: 6, kind: input, shape index: {}]   ;;  %s2101_s7 = inlined_call_operand.vmem [shape: bf16[128,32], index: 7, kind: input, shape index: {}]   ;;  %s2102_s8 = inlined_call_operand.hbm [shape: bf16[2,16,128], index: 8, kind: output, shape index: {0}]   ;;  %s2103_s9 = inlined_call_operand.hbm [shape: bf16[2,16,128], index: 9, kind: output, shape index: {1}]   ;;  %s2104_s10 = inlined_call_operand.hbm [shape: bf16[2,16,128], index: 10, kind: output, shape index: {2}]   ;;  %s2105_s11 = inlined_call_operand.hbm [shape: bf16[2,16,32], index: 11, kind: output, shape index: {3}]  }
   0x1   :  { %2114 = sst [smem:[#allocation19_spill]] %s2094_s0 }
   0x2   :  { %2115 = sst [smem:[#allocation20_spill]] %s2095_s1 }
   0x3   :  { %2116 = sst [smem:[#allocation21_spill]] %s2096_s2 }
   0x4   :  { %2117 = sst [smem:[#allocation22_spill]] %s2097_s3 }
   0x5   :  { %2118 = sst [smem:[#allocation23_spill]] %s2098_s4 }
   0x6   :  { %2119 = sst [smem:[#allocation24_spill]] %s2099_s5 }
   0x7   :  { %17 = vsyncpa [#allocation3], 0 }
   0x8   :  { %18 = vsyncpa [#allocation6], 0 }
   0x9   :  { %19 = vsyncpa [#allocation4], 0 }
   0xa   :  { %21 = vsyncpa [#allocation4 + $0x1], 0 }
   0xb   :  { %22 = vsyncpa [#allocation9], 0 }
   0xc   :  { %24 = vsyncpa [#allocation9 + $0x1], 0 }
   0xd   :  { %25 = vsyncpa [#allocation12], 0 }
   0xe   :  { %27 = vsyncpa [#allocation12 + $0x1], 0  ;;  %s1756_s17 = smov 0   ;;  %s1758_s18 = smov 0  }
   0xf   :  { %s1760_s19 = smov 0   ;;  %s1762_s20 = smov 0  }
  0x10 LB: > { %s1777_s21 = sadd.s32 4294967295, %s1681_s20   ;;  %s2109_s22 = sadd.s32 4294967294, %s1681_s20   ;;  %s1681_s20 = sphi %s1762_s20, %s2145_s20   ;;  %s1677_s19 = sphi %s1760_s19, %s2144_s19   ;;  %s1673_s18 = sphi %s1758_s18, %s2143_s18   ;;  %s1669_s17 = sphi %s1756_s17, %s2142_s17  }
  0x11   : > { %s1781_s23 = sadd.s32 1, %s1681_s20   ;;  %s213_s24 = sadd.s32 1, %s1677_s19 }
  0x12   : > { %s210_s25 = ssub.s32 %s1681_s20, %s1781_s23  ;;  %p223_p0 = scmp.ne.s32.totalorder %s1677_s19, %s1673_s18 }
  0x13   : > { %p211_p1 = scmp.eq.s32.totalorder %s210_s25, 0  ;;  %p224_p2 = scmp.eq.s32.totalorder %s1777_s21, 1 }
  0x14   : > { %p229_p3 = scmp.ne.s32.totalorder %s1673_s18, %s1669_s17  ;;  %p230_p4 = scmp.eq.s32.totalorder %s2109_s22, 1 }
  0x15   : > { %s1794_s26 = scalar_select %p211_p1, %s1677_s19, %s213_s24  }
  0x16   : > { %p1796_p5 = por %p224_p2, %p223_p0  ;;  %p1800_p6 = por %p230_p4, %p229_p3 }
  0x17   : > { %2120 = sst [smem:[#allocation18_spill]] %s1794_s26  ;;  %p1194_p7 = scmp.ge.s32.totalorder %s1681_s20, 1 }
  0x18   : > { %s2121_s27 = scalar_select %p1796_p5, 1, 0 }
  0x19   : > { %s2122_s28 = scalar_select %p1800_p6, 1, 0 }
  0x1a   : > { %p315_p8 = scmp.lt.s32.totalorder %s1681_s20, 3  ;;  %p2106_p9 = scmp.eq.s32.totalorder %s1777_s21, 0 }
  0x1b   : > { %s1683_s30 = smov [#allocation2]   ;;  %s1684_s13 = smov [#allocation5]  }
  0x1c   : > { %p1807_p10 = pnand %p1194_p7, %p315_p8  ;;  %s331_s12 = sshll.u32 %s1683_s30, 4  ;;  %s332_s12 = int_to_ptr.vmem [resolvable:$true] %s331_s12 }
  0x1d   : > { %s350_s14 = sshll.u32 %s1684_s13, 4  ;;  %s1486_s16 = scalar_lea.vmem %s332_s12, 16  ;;  %s351_s14 = int_to_ptr.vmem [resolvable:$true] %s350_s14 }
  0x1e   : > { %s2123_s29 = scalar_select %p1807_p10, 1, 0 }
  0x1f   : > { %p1369_p11 = pneg %p1807_p10  ;;  %p1487_p0 = scmp.ne.s32.totalorder %s332_s12, %s1486_s16 }
  0x20   : > { %s1493_s24 = scalar_lea.vmem %s332_s12, 32  ;;  %p1494_p3 = scmp.lt.s32.totalorder %s332_s12, %s332_s12 }
  0x21   : > { %p1815_p12 = pnand %p2106_p9, %p1369_p11  ;;  %p1495_p4 = scmp.lt.s32.totalorder %s1493_s24, %s1486_s16 }
  0x23   : > { %p1477_p13 = pneg %p1815_p12  ;;  %p1496_p7 = por %p1495_p4, %p1494_p3 }
  0x25   : > { %p1489_p1 = pnand %p1487_p0, %p1477_p13 }
  0x27   : > { %p1490_p2 = pneg %p1489_p1 }
  0x29   : > { %p1497_p8 = pnand %p1496_p7, %p1490_p2 }
  0x2b   : > { %1500 = shalt.err (!%p1497_p8)
}
  0x2c   : > { %s2125_s2 = sld [smem:[#allocation21_spill]]  ;;  %s1512_s13 = scalar_lea.vmem %s351_s14, 1024 }
  0x2d   : > { %p1513_p11 = scmp.ne.s32.totalorder %s351_s14, %s1512_s13  ;;  %p1520_p1 = scmp.lt.s32.totalorder %s351_s14, %s351_s14 }
  0x2e   : > { %p1521_p6 = scmp.lt.s32.totalorder %s1512_s13, %s1512_s13 }
  0x2f   : > { %p1515_p9 = pnand %p1513_p11, %p1477_p13 }
  0x30   : > { %p1522_p5 = por %p1521_p6, %p1520_p1 }
  0x31   : > { %p1516_p0 = pneg %p1515_p9 }
  0x32   : > { %1372 = dma.hbm_to_vmem [thread:$0]  (!%p1815_p12), %s2125_s2, 16, %s332_s12, [#allocation3]  }
  0x33   : > { %p1523_p10 = pnand %p1522_p5, %p1516_p0 }
  0x35   : > { %1526 = shalt.err (!%p1523_p10)
}
  0x36   : > { %s1685_s16 = smov 64   ;;  %s1686_s24 = smov 4  }
  0x37   : > { %1375 = dma.hbm_to_vmem [thread:$0]  (!%p1815_p12), %s2100_s6, 1024, %s351_s14, [#allocation6], %s1685_s16, %s1685_s16, %s1686_s24  }
  0x38   : > { %p2126_p2 = scmp.ne.s32.totalorder %s2123_s29, 0 }
  0x39   : > { %p2127_p3 = scmp.eq.s32.totalorder (!%p2126_p2), %s1777_s21, 0 }
  0x3a   : > { %377 = sbr.rel (%p2126_p2) target bundleno = 872 (0x368), region = 52 }
  0x3f   : > { %1648 = dma.done.wait (%p2127_p3), [#allocation3], 16   ;;  %p2128_p9 = pmov %p2127_p3 }
  0x40   : > { %p2129_p5 = pmov %p2127_p3 }
  0x41   : > { %1650 = vsyncadd (%p2128_p9), [#allocation3], 4294967280 }
  0x42   : > { %1652 = dma.done.wait (%p2129_p5), [#allocation6], 1024   ;;  %p2130_p6 = pmov %p2127_p3 }
  0x43   : > { %p436_p10 = scmp.lt.s32.totalorder %s1777_s21, 1  ;;  %s2131_s0 = sld [smem:[#allocation19_spill]]  ;;  %vm446_vm0 = vcmask 523264   ;;  %v1687_v19 = vmov 0   ;;  %v1208_v36 = vld [vmem:[#allocation2] ss:$0 sm:$0xff]  ;;  %v597_v58 = vlaneseq }
  0x44   : > { %1654 = vsyncadd (%p2130_p6), [#allocation6], 4294966272  ;;  %s2132_s3 = sld [smem:[#allocation22_spill]]  ;;  %576 = vmatprep.mubr.bf16.mxu0 %v1687_v19  ;;  %v1447_v41 = vld [vmem:[#allocation5 + $0x38] sm:$0xff]   ;;  %v1688_v43 = vmov 0.0   ;;  %v1449_v44 = vld [vmem:[#allocation5 + $0x30] sm:$0xff]  }
  0x45   : > { %s437_s22 = scalar_select %p436_p10, %s1777_s21, 1  ;;  %v1448_v42 = vld [vmem:[%s2101_s7 + $0x38] sm:$0xff]   ;;  %1313 = vmatprep.subr.bf16.mxu1 %v1688_v43  ;;  %v1450_v45 = vld [vmem:[%s2101_s7 + $0x30] sm:$0xff]   ;;  %vm1689_vm1 = vmmov 0   ;;  %v1452_v47 = vld [vmem:[%s2101_s7 + $0x28] sm:$0xff]   ;;  %v598_v59 = vshrl.u32 %v597_v58, 7 }
  0x46   : > { %s2133_s1 = sld [smem:[#allocation20_spill]]  ;;  %1314 = vmatpush3.bf16.msra.mxu1 %v1447_v41  ;;  %1329 = vmatprep.mubr.msk.bf16.mxu1 %vm1689_vm1, %v1688_v43  ;;  %v1451_v46 = vld [vmem:[#allocation5 + $0x28] sm:$0xff]   ;;  %v1453_v48 = vld [vmem:[#allocation5 + $0x20] sm:$0xff]   ;;  %v1455_v50 = vld [vmem:[#allocation5 + $0x18] sm:$0xff]   ;;  %s1909_s25 = sand.u32 1, %s1673_s18  }
  0x47   : > { %s1263_s26 = sshll.u32 %s437_s22, 3  ;;  %1315 = vmatprep.subr.bf16.mxu1 %v1688_v43  ;;  %v1454_v49 = vld [vmem:[%s2101_s7 + $0x20] sm:$0xff]   ;;  %v1456_v51 = vld [vmem:[%s2101_s7 + $0x18] sm:$0xff]   ;;  %v1458_v53 = vld [vmem:[%s2101_s7 + $0x10] sm:$0xff]   ;;  %vm600_vm2 = vcmp.ge.s32.totalorder %v598_v59, 3  ;;  %vm604_vm3 = vcmp.lt.s32.totalorder %v598_v59, 3 }
  0x48   : > { %v1457_v52 = vld [vmem:[#allocation5 + $0x10] sm:$0xff]   ;;  %v1459_v54 = vld [vmem:[#allocation5 + $0x8] sm:$0xff]   ;;  %v1461_v56 = vld [vmem:[#allocation5] sm:$0xff]   ;;  %s2134_s4 = sld [smem:[#allocation23_spill]]  ;;  %vm622_vm4 = vcmp.ge.s32.totalorder %v598_v59, 2  ;;  %vm626_vm5 = vcmp.lt.s32.totalorder %v598_v59, 2 }
  0x49   : > { %s440_s14 = scalar_lea.vmem %s2131_s0, %s1263_s26  ;;  %v1460_v55 = vld [vmem:[%s2101_s7 + $0x8] sm:$0xff]   ;;  %v1462_v57 = vld [vmem:[%s2101_s7] sm:$0xff]   ;;  %vm644_vm6 = vcmp.ge.s32.totalorder %v598_v59, 1  ;;  %vm648_vm7 = vcmp.lt.s32.totalorder %v598_v59, 1  ;;  %s1918_s22 = sshll.u32 %s1909_s25, 3 }
  0x4a   : > { %v1277_v0 = vld [vmem:[%s440_s14] sm:$0xff]   ;;  %v1435_v15 = vld [vmem:[%s2132_s3 + $0x34] ss:$8 sps:$4 sm:$0xff]   ;;  %v1437_v16 = vld [vmem:[%s2132_s3 + $0x30] ss:$8 sps:$4 sm:$0xff]   ;;  %1316 = vmatpush3.bf16.msra.mxu1 %v1449_v44  ;;  %s421_s15 = scalar_lea.vmem [#allocation8], %s1918_s22 }
  0x4b   : > { %v1278_v1 = vunpack.c.l.bf16 %v1277_v0  ;;  %v1279_v2 = vunpack.c.h.bf16 %v1277_v0  ;;  %v1438_v17 = vld [vmem:[%s2132_s3 + $0x24] ss:$8 sps:$4 sm:$0xff]   ;;  %552 = vmatprep.subr.bf16.mxu0 %v1435_v15  ;;  %v1440_v18 = vld [vmem:[%s2132_s3 + $0x20] ss:$8 sps:$4 sm:$0xff]   ;;  %v1441_v20 = vld [vmem:[%s2132_s3 + $0x14] ss:$8 sps:$4 sm:$0xff]   ;;  %1317 = vmatprep.subr.bf16.mxu1 %v1688_v43 }
  0x4c   : > { %553 = vmatpush1.bf16.msra.mxu0 %v1437_v16  ;;  %v1443_v21 = vld [vmem:[%s2132_s3 + $0x10] ss:$8 sps:$4 sm:$0xff]   ;;  %v1444_v22 = vld [vmem:[%s2132_s3 + $0x4] ss:$8 sps:$4 sm:$0xff]   ;;  %v1446_v23 = vld [vmem:[%s2132_s3] ss:$8 sps:$4 sm:$0xff]  }
  0x4d   : > { %v447_v3 = vsel %vm446_vm0, %v1278_v1, 0.0  ;;  %v450_v4 = vsel %vm446_vm0, %v1279_v2, 0.0  ;;  %554 = vmatprep.subr.bf16.mxu0 %v1438_v17  ;;  %v1207_v32 = vld [vmem:[%s2133_s1] ss:$0 sm:$0xff]  ;;  %s2135_s5 = sld [smem:[#allocation24_spill]]  ;;  %s414_s16 = scalar_lea.vmem [#allocation7], %s1918_s22 }
  0x4e   : > { %448 = vadd.xlane.f32.xlu0 %v447_v3  ;;  %1318 = vmatpush3.bf16.msra.mxu1 %v1451_v46  ;;  %v1220_v0 = vld [vmem:[%s2134_s4] ss:$0 sm:$0xff]  ;;  %s984_s24 = sshll.u32 %s421_s15, 4  ;;  %s944_s26 = sand.u32 1, %s1777_s21   ;;  %s1934_s24 = int_to_ptr.vmem [resolvable:$true] %s984_s24 }
  0x4f   : > { %1319 = vmatprep.subr.bf16.mxu1 %v1688_v43  ;;  %s1937_s12 = sshll.u32 %s414_s16, 4  ;;  %s1940_s29 = sshll.u32 %s1777_s21, 7  ;;  %s1981_s12 = int_to_ptr.vmem [resolvable:$true] %s1937_s12 }
  0x50   : > { %555 = vmatpush1.bf16.msra.mxu0 %v1440_v18  ;;  %s1946_s13 = scalar_lea.hbm %s2103_s9, %s1940_s29  ;;  %s1948_s0 = scalar_lea.sflag [#allocation9], %s944_s26 }
  0x51   : > { %556 = vmatprep.subr.bf16.mxu0 %v1441_v20  ;;  %s1527_s1 = scalar_lea.vmem %s1934_s24, 128  ;;  %p2136_p13 = scmp.ne.s32.totalorder %s2121_s27, 0 }
  0x52   : > { %451 = vadd.xlane.f32.xlu0 %v450_v4  ;;  %1320 = vmatpush3.bf16.msra.mxu1 %v1453_v48  ;;  %v1221_v4 = vld [vmem:[%s2134_s4 + $0x1] ss:$0 sm:$0xff]  ;;  %p1528_p12 = scmp.ne.s32.totalorder %s1934_s24, %s1527_s1 }
  0x53   : > { %1321 = vmatprep.subr.bf16.mxu1 %v1688_v43 }
  0x54   : > { %557 = vmatpush1.bf16.msra.mxu0 %v1443_v21  ;;  %v1223_v21 = vld [vmem:[%s2134_s4 + $0x3] ss:$0 sm:$0xff]  ;;  %p1529_p4 = pnand %p1528_p12, %p2136_p13 }
  0x55   : > { %558 = vmatprep.subr.bf16.mxu0 %v1444_v22 }
  0x56   : > { %1322 = vmatpush3.bf16.msra.mxu1 %v1455_v50  ;;  %p1530_p7 = pneg %p1529_p4 }
  0x57   : > { %1323 = vmatprep.subr.bf16.mxu1 %v1688_v43 }
  0x58   : > { %559 = vmatpush1.bf16.msra.mxu0 %v1446_v23 }
  0x59   : > { %1333 = vmatprep.subr.bf16.mxu0 %v1688_v43 }
  0x5a   : > { %1324 = vmatpush3.bf16.msra.mxu1 %v1457_v52 }
  0x5b   : > { %1325 = vmatprep.subr.bf16.mxu1 %v1688_v43 }
  0x5e   : > { %1326 = vmatpush3.bf16.msra.mxu1 %v1459_v54 }
  0x5f   : > { %1327 = vmatprep.subr.bf16.mxu1 %v1688_v43 }
  0x62   : > { %1328 = vmatpush3.bf16.msra.mxu1 %v1461_v56 }
  0xd7   : > { %v449_v5 = vpop.xlane.xlu0 %448 }
  0xd8   : > { %v454_v6 = vmul.f32 0.015625, %v449_v5 }
  0xda   : > { %v456_v7 = vsub.f32 %v1278_v1, %v454_v6 }
  0xdb   : > { %v452_v8 = vpop.xlane.xlu0 %451 }
  0xdc   : > { %v455_v9 = vmul.f32 0.015625, %v452_v8  ;;  %v458_v10 = vmul.f32 %v456_v7, %v456_v7 }
  0xde   : > { %v457_v11 = vsub.f32 %v1279_v2, %v455_v9  ;;  %v460_v12 = vsel %vm446_vm0, %v458_v10, 0.0 }
  0xdf   : > { %461 = vadd.xlane.f32.xlu1 %v460_v12 }
  0xe0   : > { %v459_v13 = vmul.f32 %v457_v11, %v457_v11 }
  0xe2   : > { %v463_v14 = vsel %vm446_vm0, %v459_v13, 0.0 }
  0xe3   : > { %464 = vadd.xlane.f32.xlu1 %v463_v14 }
 0x168   : > { %v462_v24 = vpop.xlane.xlu1 %461 }
 0x169   : > { %v466_v25 = vmul.f32 0.015625, %v462_v24 }
 0x16b   : > { %v468_v26 = vadd.f32 1e-05, %v466_v25 }
 0x16c   : > { %v465_v27 = vpop.xlane.xlu1 %464 }
 0x16d   : > { %1463 = vrsqrt.f32 %v468_v26  ;;  %v467_v28 = vmul.f32 0.015625, %v465_v27 }
 0x16f   : > { %v469_v29 = vadd.f32 1e-05, %v467_v28 }
 0x171   : > { %1465 = vrsqrt.f32 %v469_v29 }
 0x17a   : > { %v1464_v30 = vpop.eup %1463 }
 0x17b   : > { %v472_v31 = vmul.f32 %v1464_v30, %v456_v7 }
 0x17d   : > { %v481_v35 = vmul.f32 %v1207_v32, %v472_v31 }
 0x17e   : > { %v1466_v33 = vpop.eup %1465 }
 0x17f   : > { %v473_v34 = vmul.f32 %v1466_v33, %v457_v11  ;;  %v490_v38 = vadd.f32 %v1208_v36, %v481_v35  ;;  %v1222_v11 = vld [vmem:[%s2134_s4 + $0x2] ss:$0 sm:$0xff] }
 0x181   : > { %v482_v37 = vmul.f32 %v1207_v32, %v473_v34  ;;  %v1224_v32 = vld [vmem:[%s2135_s5] ss:$0 sm:$0xff] }
 0x183   : > { %v491_v39 = vadd.f32 %v1208_v36, %v482_v37 }
 0x185   : > { %v492_v40 = vpack.c.bf16 %v491_v39, %v490_v38 }
 0x187   : > { %1217 = vmatmul.mubr.msk.bf16.vlgmr.msra.gmra.mxu0 %vm446_vm0, %v492_v40 }
 0x188   : > { %1334 = vmatpush3.bf16.msra.mxu0 %v1448_v42  ;;  %1349 = vmatprep.mubr.msk.bf16.mxu0 %vm1689_vm1, %v1688_v43 }
 0x189   : > { %1335 = vmatprep.subr.bf16.mxu0 %v1688_v43 }
 0x18c   : > { %1336 = vmatpush3.bf16.msra.mxu0 %v1450_v45 }
 0x18d   : > { %1337 = vmatprep.subr.bf16.mxu0 %v1688_v43 }
 0x190   : > { %1338 = vmatpush3.bf16.msra.mxu0 %v1452_v47 }
 0x191   : > { %1339 = vmatprep.subr.bf16.mxu0 %v1688_v43 }
 0x194   : > { %1340 = vmatpush3.bf16.msra.mxu0 %v1454_v49 }
 0x195   : > { %1341 = vmatprep.subr.bf16.mxu0 %v1688_v43 }
 0x198   : > { %1342 = vmatpush3.bf16.msra.mxu0 %v1456_v51 }
 0x199   : > { %1343 = vmatprep.subr.bf16.mxu0 %v1688_v43 }
 0x19c   : > { %1344 = vmatpush3.bf16.msra.mxu0 %v1458_v53 }
 0x19d   : > { %1345 = vmatprep.subr.bf16.mxu0 %v1688_v43 }
 0x1a0   : > { %1346 = vmatpush3.bf16.msra.mxu0 %v1460_v55 }
 0x1a1   : > { %1347 = vmatprep.subr.bf16.mxu0 %v1688_v43 }
 0x1a4   : > { %1348 = vmatpush3.bf16.msra.mxu0 %v1462_v57 }
 0x247   : > { %v578_v60 = vpop.f32.mrf.mxu0 }
 0x248   : > { %v602_v62 = vrot.slane %v578_v60, 5  ;;  %v624_v1 = vrot.slane %v578_v60, 6  ;;  %v646_v6 = vrot.slane %v578_v60, 7  ;;  %v671_v30 = vmul.f32 %v1223_v21, %v578_v60 }
 0x249   : > { %v580_v61 = vpop.f32.mrf.mxu0 }
 0x24b   : > { %v582_v63 = vpop.f32.mrf.mxu0 }
 0x24c   : > { %v603_v2 = vrot.slane %v582_v63, 5  ;;  %v625_v3 = vrot.slane %v582_v63, 6  ;;  %v647_v5 = vrot.slane %v582_v63, 7  ;;  %v672_v29 = vmul.f32 %v1223_v21, %v582_v63 }
 0x24d   : > { %v584_v12 = vpop.f32.mrf.mxu0 }
 0x24e   : > { %v605_v7 = vsel %vm604_vm3, %v602_v62, %v603_v2  ;;  %v606_v8 = vsel %vm604_vm3, %v603_v2, %v602_v62  ;;  %v627_v9 = vsel %vm626_vm5, %v624_v1, %v625_v3  ;;  %v628_v10 = vsel %vm626_vm5, %v625_v3, %v624_v1 }
 0x24f   : > { %v611_v13 = vsel %vm600_vm2, %v606_v8, 0.0  ;;  %v619_v14 = vmul.f32 %v1220_v0, %v605_v7  ;;  %v633_v15 = vsel %vm622_vm4, %v628_v10, 0.0  ;;  %v641_v16 = vmul.f32 %v1221_v4, %v627_v9 }
 0x250   : > { %v618_v17 = vmul.f32 %v1220_v0, %v611_v13  ;;  %v640_v18 = vmul.f32 %v1221_v4, %v633_v15  ;;  %v649_v19 = vsel %vm648_vm7, %v646_v6, %v647_v5  ;;  %v650_v20 = vsel %vm648_vm7, %v647_v5, %v646_v6 }
 0x251   : > { %v643_v22 = vadd.f32 %v641_v16, %v619_v14  ;;  %v655_v23 = vsel %vm644_vm6, %v650_v20, 0.0  ;;  %v663_v24 = vmul.f32 %v1222_v11, %v649_v19  ;;  %v1283_v25 = vpack.c.bf16 %v584_v12, %v580_v61 }
 0x252   : > { %v662_v26 = vmul.f32 %v1222_v11, %v655_v23  ;;  %v642_v27 = vadd.f32 %v640_v18, %v618_v17 }
 0x253   : > { %v665_v28 = vadd.f32 %v663_v24, %v643_v22  ;;  %1284 = vst [vmem:[%s421_s15] sm:$0xff] %v1283_v25   ;;  %s1690_s15 = smov [#allocation8]  }
 0x254   : > { %v664_v31 = vadd.f32 %v662_v26, %v642_v27  ;;  %s1531_s2 = sshll.u32 %s1690_s15, 4  ;;  %s1532_s2 = int_to_ptr.vmem [resolvable:$false] %s1531_s2 }
 0x255   : > { %v674_v33 = vadd.f32 %v672_v29, %v665_v28  ;;  %p1534_p8 = scmp.lt.s32.totalorder %s1934_s24, %s1532_s2 }
 0x256   : > { %v673_v34 = vadd.f32 %v671_v30, %v664_v31 }
 0x257   : > { %v683_v35 = vadd.f32 %v1224_v32, %v674_v33 }
 0x258   : > { %v682_v36 = vadd.f32 %v1224_v32, %v673_v34 }
 0x259   : > { %v1226_v37 = vmul.f32 -1.442695, %v683_v35 }
 0x25a   : > { %v1225_v38 = vmul.f32 -1.442695, %v682_v36 }
 0x25b   : > { %1467 = vpow2.f32 %v1226_v37 }
 0x25c   : > { %1469 = vpow2.f32 %v1225_v38 }
 0x268   : > { %v1468_v39 = vpop.eup %1467 }
 0x269   : > { %v1470_v40 = vpop.eup %1469  ;;  %v691_v41 = vadd.f32 1.0, %v1468_v39 }
 0x26a   : > { %v690_v42 = vadd.f32 1.0, %v1470_v40 }
 0x26b   : > { %1471 = vrcp.f32 %v691_v41 }
 0x26c   : > { %1473 = vrcp.f32 %v690_v42 }
 0x278   : > { %v1472_v43 = vpop.eup %1471 }
 0x279   : > { %v1474_v44 = vpop.eup %1473  ;;  %v697_v45 = vmul.f32 %v1472_v43, %v683_v35 }
 0x27a   : > { %v696_v46 = vmul.f32 %v1474_v44, %v682_v36 }
 0x27c   : > { %v698_v47 = vpack.c.bf16 %v697_v45, %v696_v46 }
 0x27e   : > { %1289 = vst [vmem:[%s414_s16] sm:$0xff] %v698_v47   ;;  %1330 = vmatmul.mubr.bf16.vlgmr.msra.gmra.mxu1 %v698_v47  ;;  %1350 = vmatmul.mubr.bf16.vlgmr.msra.gmra.mxu0 %v698_v47  ;;  %s1533_s16 = scalar_lea.vmem %s1532_s2, 256 }
 0x27f   : > { %p1535_p11 = scmp.lt.s32.totalorder %s1533_s16, %s1527_s1 }
 0x281   : > { %p1536_p0 = por %p1535_p11, %p1534_p8 }
 0x283   : > { %p1537_p1 = pnand %p1536_p0, %p1530_p7 }
 0x285   : > { %1540 = shalt.err (!%p1537_p1)
}
 0x286   : > { %s1541_s21 = scalar_lea.hbm %s1946_s13, 128  ;;  %s1545_s30 = scalar_lea.hbm %s2103_s9, 256 }
 0x287   : > { %p1542_p2 = scmp.ne.s32.totalorder %s1946_s13, %s1541_s21  ;;  %p1546_p5 = scmp.lt.s32.totalorder %s1946_s13, %s2103_s9 }
 0x288   : > { %p1547_p6 = scmp.lt.s32.totalorder %s1545_s30, %s1541_s21 }
 0x289   : > { %p1543_p3 = pnand %p1542_p2, %p2136_p13 }
 0x28a   : > { %p1548_p10 = por %p1547_p6, %p1546_p5 }
 0x28b   : > { %p1544_p9 = pneg %p1543_p3 }
 0x28d   : > { %p1549_p12 = pnand %p1548_p10, %p1544_p9 }
 0x28f   : > { %1552 = shalt.err (!%p1549_p12)
}
 0x290   : > { %s2110_s1 = smov 64   ;;  %s2112_s2 = smov 4  }
 0x291   : > { %1362 = dma.vmem_to_hbm [thread:$0]  (%p2136_p13), %s1934_s24, 128, %s1946_s13, %s1948_s0, %s2110_s1, %s2110_s1, %s2112_s2  }
 0x292   : > { %s1978_s21 = scalar_lea.hbm %s2102_s8, %s1940_s29  ;;  %s940_s26 = scalar_lea.sflag [#allocation4], %s1909_s25 }
 0x293   : > { %s1553_s14 = scalar_lea.vmem %s1981_s12, 128  ;;  %s1693_s30 = smov [#allocation7]  }
 0x294   : > { %p1554_p4 = scmp.ne.s32.totalorder %s1981_s12, %s1553_s14  ;;  %s1557_s15 = sshll.u32 %s1693_s30, 4  ;;  %s1558_s15 = int_to_ptr.vmem [resolvable:$false] %s1557_s15 }
 0x295   : > { %s1559_s24 = scalar_lea.vmem %s1558_s15, 256  ;;  %p1560_p11 = scmp.lt.s32.totalorder %s1981_s12, %s1558_s15 }
 0x296   : > { %p1555_p7 = pnand %p1554_p4, %p2136_p13  ;;  %p1561_p0 = scmp.lt.s32.totalorder %s1559_s24, %s1553_s14 }
 0x298   : > { %p1556_p8 = pneg %p1555_p7  ;;  %p1562_p1 = por %p1561_p0, %p1560_p11 }
 0x29a   : > { %p1563_p2 = pnand %p1562_p1, %p1556_p8 }
 0x29c   : > { %1566 = shalt.err (!%p1563_p2)
}
 0x29d   : > { %s1567_s13 = scalar_lea.hbm %s1978_s21, 128  ;;  %s1571_s30 = scalar_lea.hbm %s2102_s8, 256 }
 0x29e   : > { %p1568_p3 = scmp.ne.s32.totalorder %s1978_s21, %s1567_s13  ;;  %p1572_p6 = scmp.lt.s32.totalorder %s1978_s21, %s2102_s8 }
 0x29f   : > { %p1573_p10 = scmp.lt.s32.totalorder %s1571_s30, %s1567_s13 }
 0x2a0   : > { %p1569_p9 = pnand %p1568_p3, %p2136_p13 }
 0x2a1   : > { %p1574_p12 = por %p1573_p10, %p1572_p6 }
 0x2a2   : > { %p1570_p5 = pneg %p1569_p9 }
 0x2a4   : > { %p1575_p4 = pnand %p1574_p12, %p1570_p5 }
 0x2a6   : > { %1578 = shalt.err (!%p1575_p4)
}
 0x2a7   : > { %s2137_s14 = smov 4   ;;  %s2138_s15 = smov 64   ;;  %vm936_vm8 = vcmask 257024  }
 0x2a8   : > { %1361 = dma.vmem_to_hbm [thread:$0]  (%p2136_p13), %s1981_s12, 128, %s1978_s21, %s940_s26, %s2138_s15, %s2138_s15, %s2137_s14  }
 0x2a9   : > { %s435_s1 = scalar_lea.vmem [#allocation11], %s1918_s22  ;;  %s428_s24 = scalar_lea.vmem [#allocation10], %s1918_s22 }
 0x2aa   : > { %s1016_s2 = sshll.u32 %s435_s1, 4  ;;  %s1000_s13 = sshll.u32 %s428_s24, 4  ;;  %s2010_s2 = int_to_ptr.vmem [resolvable:$true] %s1016_s2  ;;  %s2012_s13 = int_to_ptr.vmem [resolvable:$true] %s1000_s13 }
 0x2ab   : > { %s2018_s26 = scalar_lea.hbm %s2104_s10, %s1940_s29  ;;  %s2024_s16 = scalar_lea.hbm %s2105_s11, %s1940_s29 }
 0x2ac   : > { %s1579_s30 = scalar_lea.vmem %s2012_s13, 128  ;;  %s1694_s4 = smov [#allocation10]  }
 0x2ad   : > { %p1580_p7 = scmp.ne.s32.totalorder %s2012_s13, %s1579_s30  ;;  %s1583_s5 = sshll.u32 %s1694_s4, 4  ;;  %s1584_s5 = int_to_ptr.vmem [resolvable:$false] %s1583_s5 }
 0x2ae   : > { %s1585_s12 = scalar_lea.vmem %s1584_s5, 256  ;;  %p1586_p0 = scmp.lt.s32.totalorder %s2012_s13, %s1584_s5 }
 0x2af   : > { %p1581_p8 = pnand %p1580_p7, %p2136_p13  ;;  %p1587_p1 = scmp.lt.s32.totalorder %s1585_s12, %s1579_s30 }
 0x2b1   : > { %p1582_p11 = pneg %p1581_p8  ;;  %p1588_p2 = por %p1587_p1, %p1586_p0 }
 0x2b3   : > { %p1589_p3 = pnand %p1588_p2, %p1582_p11 }
 0x33e   : > { %v806_v48 = vpop.f32.mrf.mxu1  ;;  %v921_v49 = vpop.f32.mrf.mxu0 }
 0x33f   : > { %v1270_v50 = vpack.c.bf16 %v921_v49, %v921_v49 }
 0x340   : > { %v1331_v51 = vpop.f32.mrf.mxu1  ;;  %v1351_v52 = vpop.f32.mrf.mxu0 }
 0x341   : > { %937 = vst.msk [vmem:[%s435_s1] sm:$0xf] %vm936_vm8, %v1270_v50 }
 0x342   : > { %v809_v53 = vpop.f32.mrf.mxu1  ;;  %v924_v54 = vpop.f32.mrf.mxu0 }
 0x343   : > { %v1293_v55 = vpack.c.bf16 %v809_v53, %v806_v48  ;;  %v1271_v56 = vpack.c.bf16 %v924_v54, %v924_v54 }
 0x344   : > { %v1332_v57 = vpop.f32.mrf.mxu1  ;;  %v1352_v58 = vpop.f32.mrf.mxu0 }
 0x345   : > { %1294 = vst [vmem:[%s428_s24] sm:$0xff] %v1293_v55   ;;  %938 = vst.msk [vmem:[%s435_s1 + $0x4] sm:$0xf] %vm936_vm8, %v1271_v56 }
 0x346   : > { %1592 = shalt.err (!%p1589_p3)
}
 0x347   : > { %s1593_s29 = scalar_lea.hbm %s2018_s26, 128  ;;  %s1597_s4 = scalar_lea.hbm %s2104_s10, 256 }
 0x348   : > { %p1594_p9 = scmp.ne.s32.totalorder %s2018_s26, %s1593_s29  ;;  %p1598_p10 = scmp.lt.s32.totalorder %s2018_s26, %s2104_s10 }
 0x349   : > { %p1599_p12 = scmp.lt.s32.totalorder %s1597_s4, %s1593_s29 }
 0x34a   : > { %p1595_p5 = pnand %p1594_p9, %p2136_p13 }
 0x34b   : > { %p1600_p4 = por %p1599_p12, %p1598_p10 }
 0x34c   : > { %p1596_p6 = pneg %p1595_p5 }
 0x34e   : > { %p1601_p7 = pnand %p1600_p4, %p1596_p6 }
 0x350   : > { %1604 = shalt.err (!%p1601_p7)
}
 0x351   : > { %1363 = dma.vmem_to_hbm [thread:$0]  (%p2136_p13), %s2012_s13, 128, %s2018_s26, %s1948_s0, %s2138_s15, %s2138_s15, %s2137_s14  }
 0x352   : > { %s955_s5 = scalar_lea.sflag [#allocation12], %s1909_s25  ;;  %s1605_s3 = scalar_lea.vmem %s2010_s2, 128 }
 0x353   : > { %p1606_p8 = scmp.ne.s32.totalorder %s2010_s2, %s1605_s3  ;;  %s1695_s30 = smov [#allocation11]  }
 0x354   : > { %s1609_s12 = sshll.u32 %s1695_s30, 4  ;;  %s1610_s12 = int_to_ptr.vmem [resolvable:$false] %s1609_s12 }
 0x355   : > { %p1607_p11 = pnand %p1606_p8, %p2136_p13  ;;  %s1611_s29 = scalar_lea.vmem %s1610_s12, 256 }
 0x356   : > { %p1612_p1 = scmp.lt.s32.totalorder %s2010_s2, %s1610_s12  ;;  %p1613_p2 = scmp.lt.s32.totalorder %s1611_s29, %s1605_s3 }
 0x357   : > { %p1608_p0 = pneg %p1607_p11 }
 0x358   : > { %p1614_p3 = por %p1613_p2, %p1612_p1 }
 0x35a   : > { %p1615_p9 = pnand %p1614_p3, %p1608_p0 }
 0x35c   : > { %1618 = shalt.err (!%p1615_p9)
}
 0x35d   : > { %s1619_s0 = scalar_lea.hbm %s2024_s16, 128  ;;  %s1623_s26 = scalar_lea.hbm %s2105_s11, 256 }
 0x35e   : > { %p1620_p5 = scmp.ne.s32.totalorder %s2024_s16, %s1619_s0  ;;  %p1624_p12 = scmp.lt.s32.totalorder %s2024_s16, %s2105_s11 }
 0x35f   : > { %p1625_p4 = scmp.lt.s32.totalorder %s1623_s26, %s1619_s0 }
 0x360   : > { %p1621_p6 = pnand %p1620_p5, %p2136_p13 }
 0x361   : > { %p1626_p7 = por %p1625_p4, %p1624_p12 }
 0x362   : > { %p1622_p10 = pneg %p1621_p6 }
 0x364   : > { %p1627_p8 = pnand %p1626_p7, %p1622_p10 }
 0x366   : > { %1630 = shalt.err (!%p1627_p8)
}
 0x367   : > { %1364 = dma.vmem_to_hbm [thread:$0]  (%p2136_p13), %s2010_s2, 128, %s2024_s16, %s955_s5, %s2138_s15, %s2138_s15, %s2137_s14  }
 0x368 PF: > { %p1393_p11 = scmp.ge.s32.totalorder %s1681_s20, 2  ;;  %s1031_s4 = sand.u32 1, %s1669_s17  }
 0x369   : > { %p2139_p0 = scmp.ne.s32.totalorder %s2122_s28, 0  ;;  %s1032_s21 = scalar_lea.sflag [#allocation4], %s1031_s4 }
 0x36b   : > { %p1377_p1 = pnand %p1393_p11, %p2139_p0 }
 0x36d   : > { %p1378_p2 = pneg %p1377_p1 }
 0x36f   : > { %1656 = dma.done.wait (%p1378_p2), %s1032_s21, 128  }
 0x370   : > { %1658 = vsyncadd (%p1378_p2), %s1032_s21, 4294967168  ;;  %s2140_s27 = sadd.s32 4294967294, %s1681_s20  }
 0x371   : > { %s1040_s22 = sand.u32 1, %s2140_s27  }
 0x372   : > { %s1041_s3 = scalar_lea.sflag [#allocation9], %s1040_s22 }
 0x373   : > { %1660 = dma.done.wait (%p1378_p2), %s1041_s3, 256  }
 0x374   : > { %1662 = vsyncadd (%p1378_p2), %s1041_s3, 4294967040  ;;  %s1059_s30 = scalar_lea.sflag [#allocation12], %s1031_s4 }
 0x375   : > { %1664 = dma.done.wait (%p1378_p2), %s1059_s30, 128  }
 0x376   : > { %1666 = vsyncadd (%p1378_p2), %s1059_s30, 4294967168  ;;  %s2141_s14 = sld [smem:[#allocation18_spill]]  ;;  %p30_p13 = scmp.ge.s32.totalorder %s1781_s23, 4  }
 0x377   : > { %s2142_s17 = smov %s1673_s18  ;;  %s2143_s18 = smov %s1677_s19 }
 0x378   : > { %s2145_s20 = smov %s1781_s23  ;;  %32 = sbr.rel (!%p30_p13) target bundleno = 16 (0x10), region = 145 }
 0x37c   : > { %s2144_s19 = smov %s2141_s14 }
 0x37d   :  { %1064 = vsyncpa [#allocation3], 1 }
 0x37e   :  { %1066 = vsyncpa [#allocation3 + $0x1], 1 }
 0x37f   :  { %1067 = vsyncpa [#allocation6], 1 }
 0x380   :  { %1068 = vsyncpa [#allocation4], 1 }
 0x381   :  { %1070 = vsyncpa [#allocation4 + $0x1], 1 }
 0x382   :  { %1071 = vsyncpa [#allocation9], 1 }
 0x383   :  { %1073 = vsyncpa [#allocation9 + $0x1], 1 }
 0x384   :  { %1074 = vsyncpa [#allocation12], 1 }
 0x385   :  { %1076 = vsyncpa [#allocation12 + $0x1], 1 }

</bundles_post_ra>
